<compile_context>
chip_gen: v7x
topology: tpu7x:2x2x1
jax: 0.10.0
libtpu: 0.0.40
codegen_flags: <defaults>
</compile_context>

<pallas_src>
import functools

import jax
import jax.numpy as jnp
from jax.experimental import pallas as pl
from jax.experimental.pallas import tpu as pltpu

_LANE = 128
_SUBLANE = 8
_SMALL_TOTAL_BYTES = 2 * 1024 * 1024    # collapse to a single block below this
_TARGET_BLOCK_BYTES = 2 * 1024 * 1024   # ~2 MiB input block for large inputs
_VMEM_LIMIT_BYTES = 32 * 1024 * 1024    # safe on v5e / v6e / v7x


def _cdiv(a, b):
    return -(-a // b)


def _round_up(n, m):
    return _cdiv(n, m) * m


def _choose_tile(n, desired, align):
    """Pick a tile (multiple of `align`, <= desired) with balanced, small padding."""
    n_pad0 = _round_up(n, align)
    desired = max(align, min(_round_up(desired, align), n_pad0))
    g = _cdiv(n_pad0, desired)
    tile = _round_up(_cdiv(n_pad0, g), align)
    return tile, tile * g


def _softmax_kernel(x_ref, o_ref, *, temp, axis, approx):
    """softmax(x * temp) along `axis` of the block, computed in f32."""
    x = x_ref[...].astype(jnp.float32) * temp
    m = jnp.max(x, axis=axis, keepdims=True)
    e = jnp.exp(x - m)
    s = jnp.sum(e, axis=axis, keepdims=True)
    inv = pl.reciprocal(s, approx=approx)   # one reciprocal per row (EUP), then mul
    o_ref[...] = (e * inv).astype(o_ref.dtype)


def _launch(xp, block_shape, grid, index_map, *, temp, axis, approx):
    return pl.pallas_call(
        functools.partial(_softmax_kernel, temp=temp, axis=axis, approx=approx),
        out_shape=jax.ShapeDtypeStruct(xp.shape, xp.dtype),
        grid_spec=pltpu.PrefetchScalarGridSpec(
            num_scalar_prefetch=0,
            grid=grid,
            in_specs=[pl.BlockSpec(block_shape, index_map)],
            out_specs=pl.BlockSpec(block_shape, index_map),
        ),
        compiler_params=pltpu.CompilerParams(
            dimension_semantics=("parallel",),
            vmem_limit_bytes=_VMEM_LIMIT_BYTES,
        ),
    )(xp)


def reg_softmax(x: jax.Array, temperature: float, *, approx_reciprocal: bool = False) -> jax.Array:
    """Equivalent of F.softmax(x * temperature, dim=-1)."""
    orig_shape = x.shape
    d = int(orig_shape[-1])
    rows = 1
    for s in orig_shape[:-1]:
        rows *= int(s)
    x2 = x.reshape(rows, d)
    temp = float(temperature)

    itemsize = max(jnp.dtype(x.dtype).itemsize, 4)   # budget for the f32 compute copy
    total_bytes = rows * d * itemsize

    if d < _LANE:
        # ---- lane-dense small-D path: rows -> lanes, D -> sublanes -------------
        xT = x2.T                                    # (d, rows), cheap XLA transpose
        if total_bytes <= _SMALL_TOTAL_BYTES:
            ct, rows_p = rows, rows                  # single block, grid=(1,)
        else:
            desired = max(_LANE, _TARGET_BLOCK_BYTES // (d * itemsize))
            ct, rows_p = _choose_tile(rows, desired, _LANE)
        if rows_p != rows:
            xT = jnp.pad(xT, ((0, 0), (0, rows_p - rows)))
        outT = _launch(
            xT, (d, ct), (rows_p // ct,), lambda i: (0, i),
            temp=temp, axis=0, approx=approx_reciprocal)
        if rows_p != rows:
            outT = outT[:, :rows]
        out2 = outT.T
    else:
        # ---- large-D path: rows -> sublanes, D -> lanes -------------------------
        if total_bytes <= _SMALL_TOTAL_BYTES:
            rt, rows_p = rows, rows                  # single block, grid=(1,)
        else:
            desired = max(_SUBLANE, _TARGET_BLOCK_BYTES // (d * itemsize))
            rt, rows_p = _choose_tile(rows, desired, _SUBLANE)
        xp = x2 if rows_p == rows else jnp.pad(x2, ((0, rows_p - rows), (0, 0)))
        out2 = _launch(
            xp, (rt, d), (rows_p // rt,), lambda i: (i, 0),
            temp=temp, axis=-1, approx=approx_reciprocal)
        if rows_p != rows:
            out2 = out2[:rows]

    return out2.reshape(orig_shape)


if __name__ == "__main__":
    key = jax.random.PRNGKey(0)
    temperature = 2.5

    # Primary test shape (small D -> lane-dense transposed path, single block).
    x = jax.random.normal(key, (2, 4, 16, 16), dtype=jnp.float32)
    out = jax.block_until_ready(reg_softmax(x, temperature))
    ref = jax.nn.softmax(x * temperature, axis=-1)
    assert out.shape == x.shape and out.dtype == x.dtype
    assert jnp.allclose(out, ref, atol=1e-6, rtol=1e-6)

    # Secondary check: large-D path (rows on sublanes, D on lanes).
    x2 = jax.random.normal(jax.random.PRNGKey(1), (4, 8, 256), dtype=jnp.float32)
    out2 = jax.block_until_ready(reg_softmax(x2, temperature))
    ref2 = jax.nn.softmax(x2 * temperature, axis=-1)
    assert jnp.allclose(out2, ref2, atol=1e-6, rtol=1e-6)

    print("KERNEL_OK")
</pallas_src>

<mosaic_0001>
module attributes {stable_mosaic.version = 11 : i64} {
  func.func @_softmax_kernel(%arg0: i32, %arg1: memref<16x128xf32, #tpu.memory_space<vmem>>, %arg2: memref<16x128xf32, #tpu.memory_space<vmem>>) attributes {dimension_semantics = [#tpu.dimension_semantics<parallel>], iteration_bounds = array<i64: 1>, scalar_prefetch = 0 : i64, scratch_operands = 0 : i64, tpu.core_type = #tpu.core_type<tc>, window_params = [{transform_indices = @transform_0, window_bounds = array<i64: 16, 128>}, {transform_indices = @transform_1, window_bounds = array<i64: 16, 128>}]} {
    %c0 = arith.constant 0 : index
    %c0_0 = arith.constant 0 : index
    %0 = vector.load %arg1[%c0, %c0_0] : memref<16x128xf32, #tpu.memory_space<vmem>>, vector<16x128xf32>
    %cst = arith.constant 2.500000e+00 : f32
    %1 = vector.broadcast %cst : f32 to vector<16x128xf32>
    %2 = arith.mulf %0, %1 : vector<16x128xf32>
    %cst_1 = arith.constant dense<0xFF800000> : vector<128xf32>
    %3 = vector.multi_reduction <maximumf>, %2, %cst_1 [0] : vector<16x128xf32> to vector<128xf32>
    %4 = vector.shape_cast %3 : vector<128xf32> to vector<1x128xf32>
    %5 = vector.broadcast %4 : vector<1x128xf32> to vector<16x128xf32>
    %6 = arith.subf %2, %5 : vector<16x128xf32>
    %7 = math.exp %6 : vector<16x128xf32>
    %cst_2 = arith.constant dense<0.000000e+00> : vector<128xf32>
    %8 = vector.multi_reduction <add>, %7, %cst_2 [0] : vector<16x128xf32> to vector<128xf32>
    %9 = vector.shape_cast %8 : vector<128xf32> to vector<1x128xf32>
    %10 = tpu.reciprocal %9 : vector<1x128xf32> -> vector<1x128xf32>
    %11 = vector.broadcast %10 : vector<1x128xf32> to vector<16x128xf32>
    %12 = arith.mulf %7, %11 : vector<16x128xf32>
    %c0_3 = arith.constant 0 : index
    %c0_4 = arith.constant 0 : index
    %13 = vector.load %arg2[%c0_3, %c0_4] : memref<16x128xf32, #tpu.memory_space<vmem>>, vector<16x128xf32>
    tpu.vector_store %arg2[%c0_3, %c0_4], %12 {strides = array<i32>} : memref<16x128xf32, #tpu.memory_space<vmem>>, vector<16x128xf32>,
    return
  }
  func.func @transform_0(%arg0: i32) -> (i32, i32) {
    %c0_i32 = arith.constant 0 : i32
    %c0_i32_0 = arith.constant 0 : i32
    return %c0_i32, %arg0 : i32, i32
  }
  func.func @transform_1(%arg0: i32) -> (i32, i32) {
    %c0_i32 = arith.constant 0 : i32
    %c0_i32_0 = arith.constant 0 : i32
    return %c0_i32, %arg0 : i32, i32
  }
}

</mosaic_0001>

<bundles_post_ra>
// kernel: tpu_custom_call.1
= control target key start
LH: loop header
LB: loop body
LE: loop exit
PB: predicated region body
PF: predicated region fallthrough
CT: control target
= control target key end

     0   :  { %6 = vsyncpa [#allocation3], 0  ;;  %s171_s0 = inlined_call_operand.hbm [shape: f32[16,128], index: 0, kind: input, shape index: {}]   ;;  %s172_s1 = inlined_call_operand.hbm [shape: f32[16,128], index: 1, kind: output, shape index: {}]  }
   0x1   :  { %7 = vsyncpa [#allocation4], 0  ;;  %s127_s6 = smov [#allocation2]   ;;  %s79_s10 = scalar_lea.hbm %s171_s0, 256 }
   0x2   :  { %s13_s7 = sshll.u32 %s127_s6, 4  ;;  %p80_p0 = scmp.ne.s32.totalorder %s171_s0, %s79_s10  ;;  %s14_s7 = int_to_ptr.vmem [resolvable:$true] %s13_s7 }
   0x3   :  { %p83_p1 = scmp.lt.u32.totalorder %s79_s10, %s171_s0 }
   0x5   :  { %p85_p2 = pnand %p83_p1, %p80_p0 }
   0x7   :  { %88 = shalt.err (!%p85_p2)
}
   0x8   :  { %s89_s15 = scalar_lea.vmem %s14_s7, 256  ;;  %p94_p4 = scmp.lt.s32.totalorder %s14_s7, %s14_s7 }
   0x9   :  { %p90_p3 = scmp.ne.s32.totalorder %s14_s7, %s89_s15  ;;  %p95_p5 = scmp.lt.s32.totalorder %s89_s15, %s89_s15 }
   0xb   :  { %p96_p6 = por %p95_p5, %p94_p4 }
   0xd   :  { %p97_p7 = pnand %p96_p6, %p90_p3 }
   0xf   :  { %100 = shalt.err (!%p97_p7)
}
  0x10   :  { %s128_s16 = smov 128   ;;  %s129_s17 = smov 8  }
  0x11   :  { %19 = dma.hbm_to_vmem [thread:$0]  %s171_s0, 256, %s14_s7, [#allocation3], %s128_s16, %s128_s16, %s129_s17  }
  0x12   :  { %123 = dma.done.wait [#allocation3], 256  }
  0x13   :  { %124 = vsyncadd [#allocation3], 4294967040  ;;  %v23_v0 = vld [vmem:[#allocation2] sm:$0xff]  ;;  %v24_v1 = vld [vmem:[#allocation2 + $0x8] sm:$0xff]  ;;  %s130_s0 = smov [#allocation5]  }
  0x14   :  { %v25_v2 = vmul.f32 2.5, %v23_v0  ;;  %v26_v3 = vmul.f32 2.5, %v24_v1  ;;  %s57_s20 = sshll.u32 %s130_s0, 4  ;;  %s58_s20 = int_to_ptr.vmem [resolvable:$true] %s57_s20 }
  0x15   :  { %s101_s21 = scalar_lea.vmem %s58_s20, 256  ;;  %p106_p9 = scmp.lt.s32.totalorder %s58_s20, %s58_s20 }
  0x16   :  { %v27_v4 = vmax.f32 %v25_v2, %v26_v3  ;;  %p102_p8 = scmp.ne.s32.totalorder %s58_s20, %s101_s21  ;;  %p107_p10 = scmp.lt.s32.totalorder %s101_s21, %s101_s21 }
  0x18   :  { %v28_v5 = vrot.slane %v27_v4, 4  ;;  %p108_p11 = por %p107_p10, %p106_p9 }
  0x1a   :  { %v29_v6 = vmax.f32 %v27_v4, %v28_v5  ;;  %p109_p12 = pnand %p108_p11, %p102_p8 }
  0x1c   :  { %v30_v7 = vrot.slane %v29_v6, 2 }
  0x1e   :  { %v31_v8 = vmax.f32 %v29_v6, %v30_v7 }
  0x20   :  { %v32_v9 = vrot.slane %v31_v8, 1 }
  0x22   :  { %v33_v10 = vmax.f32 %v31_v8, %v32_v9 }
  0x24   :  { %v34_v11 = vsub.f32 %v25_v2, %v33_v10  ;;  %v35_v12 = vsub.f32 %v26_v3, %v33_v10 }
  0x26   :  { %v36_v13 = vmul.f32 1.442695, %v34_v11  ;;  %v38_v14 = vmul.f32 1.442695, %v35_v12 }
  0x28   :  { %73 = vpow2.f32 %v36_v13 }
  0x29   :  { %75 = vpow2.f32 %v38_v14 }
  0x32   :  { %v74_v15 = vpop.eup %73 }
  0x33   :  { %v76_v16 = vpop.eup %75 }
  0x34   :  { %v40_v17 = vadd.f32 %v76_v16, %v74_v15 }
  0x36   :  { %v41_v18 = vrot.slane %v40_v17, 4 }
  0x38   :  { %v42_v19 = vadd.f32 %v41_v18, %v40_v17 }
  0x3a   :  { %v43_v20 = vrot.slane %v42_v19, 2 }
  0x3c   :  { %v44_v21 = vadd.f32 %v43_v20, %v42_v19 }
  0x3e   :  { %v45_v22 = vrot.slane %v44_v21, 1 }
  0x40   :  { %v46_v23 = vadd.f32 %v45_v22, %v44_v21 }
  0x42   :  { %77 = vrcp.f32 %v46_v23 }
  0x4c   :  { %v78_v24 = vpop.eup %77 }
  0x4d   :  { %v48_v25 = vmul.f32 %v78_v24, %v74_v15  ;;  %v49_v26 = vmul.f32 %v78_v24, %v76_v16 }
  0x4f   :  { %50 = vst [vmem:[#allocation5] sm:$0xff] %v48_v25  ;;  %51 = vst [vmem:[#allocation5 + $0x8] sm:$0xff] %v49_v26 }
  0x50   :  { %112 = shalt.err (!%p109_p12)
}
  0x51   :  { %s113_s24 = scalar_lea.hbm %s172_s1, 256 }
  0x52   :  { %p114_p13 = scmp.ne.s32.totalorder %s172_s1, %s113_s24  ;;  %p117_p0 = scmp.lt.u32.totalorder %s113_s24, %s172_s1 }
  0x54   :  { %p119_p1 = pnand %p117_p0, %p114_p13 }
  0x56   :  { %122 = shalt.err (!%p119_p1)
}
  0x57   :  { %63 = dma.vmem_to_hbm [thread:$0]  %s58_s20, 256, %s172_s1, [#allocation4], %s128_s16, %s128_s16, %s129_s17  }
  0x58   :  { %125 = dma.done.wait [#allocation4], 256  }
  0x59   :  { %126 = vsyncadd [#allocation4], 4294967040 }
  0x5a   :  { %67 = vsyncpa [#allocation3], 1 }
  0x5b   :  { %68 = vsyncpa [#allocation4], 1 }

</bundles_post_ra>
